<compile_context>
chip_gen: v5e
topology: v5e:2x2
jax: 0.10.0
libtpu: 0.0.40
codegen_flags: <defaults>
</compile_context>

<pallas_src>
import jax
import jax.numpy as jnp
import numpy as np
from jax.experimental import pallas as pl
from jax.experimental.pallas import tpu as pltpu

HIDDEN = 32      # hidden_size
VOCAB = 16       # output_size
ENC_LEN = 8      # encoder sequence length actually used
LANE = 128       # lane-dense padding for the tiny outputs
NEG = -1e30      # additive mask value for padded lanes


def _attn_decoder_kernel(
    tok_ref,                        # SMEM (N,) int32 token ids (scalar prefetch)
    h0_ref,                         # (1, H)       initial hidden
    emb_ref,                        # (V, H)       embedding table
    enc_ref,                        # (LANE, H)    encoder outputs, zero-padded rows
    sbias_ref,                      # (1, LANE)    0 for valid rows, NEG for padded rows
    wce_ref, wca_ref, bc_ref,       # (H,H),(H,H),(1,H)  attn_combine split (embed / attn parts)
    wih_ref, bih_ref,               # (3,H,H),(3,1,H)    GRU input weights, gate-major (r,z,n)
    whh_ref, bhh_ref,               # (3,H,H),(3,1,H)    GRU hidden weights, gate-major (r,z,n)
    wout_ref, bout_ref,             # (H,LANE),(1,LANE)  output projection, lane-padded
    logp_ref,                       # out (1,1,LANE) per-step log-probs (padded)
    attnw_ref,                      # out (1,1,LANE) per-step attention weights (padded)
    hout_ref,                       # out (1,H)      carried / final hidden state
):
    step = pl.program_id(0)

    @pl.when(step == 0)
    def _():
        hout_ref[...] = h0_ref[...]

    h = hout_ref[...]                               # (1, H) hidden carried across grid steps
    tok = tok_ref[step]
    embedded = emb_ref[pl.ds(tok, 1), :]            # (1, H) embedding lookup
    # TODO(synk): nn.Dropout(p=0.1) is identity in eval mode; training-mode dropout omitted.

    enc = enc_ref[...]                              # (LANE, H)

    # attention: scores (1, LANE) = h @ enc.T + mask ; softmax over lane axis
    scores = jax.lax.dot_general(h, enc, (((1,), (1,)), ((), ())),
                                 preferred_element_type=jnp.float32) + sbias_ref[...]
    m = jnp.max(scores, axis=1, keepdims=True)
    e = jnp.exp(scores - m)                         # padded lanes underflow to exactly 0
    attn_w = e * pl.reciprocal(jnp.sum(e, axis=1, keepdims=True), approx=True)
    attnw_ref[0] = attn_w

    attn_applied = jnp.dot(attn_w, enc, preferred_element_type=jnp.float32)     # (1, H)

    # attn_combine(cat(embedded, attn_applied)) as two matmuls summed (no lane concat)
    x = (jnp.dot(embedded, wce_ref[...], preferred_element_type=jnp.float32)
         + jnp.dot(attn_applied, wca_ref[...], preferred_element_type=jnp.float32)
         + bc_ref[...])
    x = jnp.maximum(x, 0.0)

    # GRU cell (PyTorch gate order r, z, n); gate-major layout -> full-tile reads, no lane slicing
    r = jax.nn.sigmoid(jnp.dot(x, wih_ref[0], preferred_element_type=jnp.float32) + bih_ref[0]
                       + jnp.dot(h, whh_ref[0], preferred_element_type=jnp.float32) + bhh_ref[0])
    z = jax.nn.sigmoid(jnp.dot(x, wih_ref[1], preferred_element_type=jnp.float32) + bih_ref[1]
                       + jnp.dot(h, whh_ref[1], preferred_element_type=jnp.float32) + bhh_ref[1])
    gh_n = jnp.dot(h, whh_ref[2], preferred_element_type=jnp.float32) + bhh_ref[2]
    n = jnp.tanh(jnp.dot(x, wih_ref[2], preferred_element_type=jnp.float32) + bih_ref[2] + r * gh_n)
    h_new = (1.0 - z) * n + z * h
    hout_ref[...] = h_new

    # output projection (lane-padded) + log_softmax; padded lanes carry NEG bias -> no effect
    logits = jnp.dot(h_new, wout_ref[...], preferred_element_type=jnp.float32) + bout_ref[...]
    lmax = jnp.max(logits, axis=1, keepdims=True)
    lse = lmax + jnp.log(jnp.sum(jnp.exp(logits - lmax), axis=1, keepdims=True))
    logp_ref[0] = logits - lse


def prep_params(params):
    """One-time parameter prep (hoisted out of the per-step call path):
    transpose to (in,out), split attn_combine, gate-major GRU weights, lane-pad output proj."""
    H = params["w_comb"].shape[0]
    V = params["emb"].shape[0]
    w_comb = params["w_comb"]                                           # (H, 2H) PyTorch (out,in)
    w_out_p = jnp.zeros((H, LANE), jnp.float32).at[:, :V].set(params["w_out"].T)
    b_out_p = jnp.full((1, LANE), NEG, jnp.float32).at[0, :V].set(params["b_out"])
    return {
        "emb":  params["emb"].astype(jnp.float32),                      # (V, H)
        "wce":  w_comb[:, :H].T,                                        # (H, H)  embedded part
        "wca":  w_comb[:, H:].T,                                        # (H, H)  attn_applied part
        "bc":   params["b_comb"].reshape(1, H),
        "wih":  params["w_ih"].reshape(3, H, H).transpose(0, 2, 1),     # (3, in, out)
        "bih":  params["b_ih"].reshape(3, 1, H),
        "whh":  params["w_hh"].reshape(3, H, H).transpose(0, 2, 1),     # (3, in, out)
        "bhh":  params["b_hh"].reshape(3, 1, H),
        "wout": w_out_p,                                                # (H, LANE)
        "bout": b_out_p,                                                # (1, LANE)
        "V": V, "H": H,
    }


def prep_encoder(encoder_outputs):
    """Per-sequence prep: (L,1,H) -> (L,H), zero-pad rows to LANE, build score padding mask."""
    L, _, H = encoder_outputs.shape
    enc = encoder_outputs.reshape(L, H).astype(jnp.float32)
    enc_pad = jnp.zeros((LANE, H), jnp.float32).at[:L, :].set(enc)
    sbias = jnp.full((1, LANE), NEG, jnp.float32).at[0, :L].set(0.0)
    return enc_pad, sbias, L


def attn_decoder_decode(tokens, hidden, encoder_outputs, prepped):
    """Run len(tokens) teacher-forced decoder steps inside ONE pallas_call.

    tokens: (N,) int32; hidden: (1,1,H); encoder_outputs: (L,1,H) seq-first.
    Returns (logp (N,V), final hidden (1,1,H), attn weights (N,L))."""
    H, V = prepped["H"], prepped["V"]
    N = int(tokens.shape[0])
    enc_pad, sbias, L = prep_encoder(encoder_outputs)
    tokens = jnp.clip(tokens.astype(jnp.int32), 0, V - 1)   # bound the embedding gather index
    h0 = hidden.reshape(1, H).astype(jnp.float32)

    const2 = lambda i, tok: (0, 0)
    const3 = lambda i, tok: (0, 0, 0)
    step3 = lambda i, tok: (i, 0, 0)

    grid_spec = pltpu.PrefetchScalarGridSpec(
        num_scalar_prefetch=1,
        grid=(N,),
        in_specs=[
            pl.BlockSpec((1, H), const2),          # h0
            pl.BlockSpec((V, H), const2),          # embedding table (resident)
            pl.BlockSpec((LANE, H), const2),       # padded encoder outputs (resident)
            pl.BlockSpec((1, LANE), const2),       # score padding mask
            pl.BlockSpec((H, H), const2),          # wce
            pl.BlockSpec((H, H), const2),          # wca
            pl.BlockSpec((1, H), const2),          # bc
            pl.BlockSpec((3, H, H), const3),       # wih (gate-major)
            pl.BlockSpec((3, 1, H), const3),       # bih
            pl.BlockSpec((3, H, H), const3),       # whh (gate-major)
            pl.BlockSpec((3, 1, H), const3),       # bhh
            pl.BlockSpec((H, LANE), const2),       # wout (lane-padded)
            pl.BlockSpec((1, LANE), const2),       # bout (lane-padded)
        ],
        out_specs=[
            pl.BlockSpec((1, 1, LANE), step3),     # per-step log-probs (lane-dense)
            pl.BlockSpec((1, 1, LANE), step3),     # per-step attention weights (lane-dense)
            pl.BlockSpec((1, H), const2),          # carried / final hidden (revisited block)
        ],
    )

    logp_p, attn_p, h_out = pl.pallas_call(
        _attn_decoder_kernel,
        grid_spec=grid_spec,
        out_shape=(
            jax.ShapeDtypeStruct((N, 1, LANE), jnp.float32),
            jax.ShapeDtypeStruct((N, 1, LANE), jnp.float32),
            jax.ShapeDtypeStruct((1, H), jnp.float32),
        ),
        compiler_params=pltpu.CompilerParams(
            dimension_semantics=("arbitrary",),    # hidden state carried step->step: sequential
        ),
    )(tokens, h0, prepped["emb"], enc_pad, sbias,
      prepped["wce"], prepped["wca"], prepped["bc"],
      prepped["wih"], prepped["bih"], prepped["whh"], prepped["bhh"],
      prepped["wout"], prepped["bout"])

    return logp_p[:, 0, :V], h_out.reshape(1, 1, H), attn_p[:, 0, :L]


def attn_decoder_forward(tok, hidden, encoder_outputs, prepped):
    """Single decoder step, identical interface/semantics to AttnDecoderRNN.forward."""
    return attn_decoder_decode(tok.reshape(-1), hidden, encoder_outputs, prepped)


# ---------------------------- pure-JAX references ----------------------------

def reference_forward(tok, hidden, encoder_outputs, params):
    H = hidden.shape[-1]
    emb = params["emb"][tok[0]][None, :]
    h = hidden.reshape(1, H)
    enc = encoder_outputs.reshape(encoder_outputs.shape[0], H)
    attn_w = jax.nn.softmax(h @ enc.T, axis=1)
    attn_applied = attn_w @ enc
    cat = jnp.concatenate([emb, attn_applied], axis=1)
    x = jax.nn.relu(cat @ params["w_comb"].T + params["b_comb"])
    gi = x @ params["w_ih"].T + params["b_ih"]
    gh = h @ params["w_hh"].T + params["b_hh"]
    r = jax.nn.sigmoid(gi[:, :H] + gh[:, :H])
    z = jax.nn.sigmoid(gi[:, H:2 * H] + gh[:, H:2 * H])
    n = jnp.tanh(gi[:, 2 * H:] + r * gh[:, 2 * H:])
    h_new = (1.0 - z) * n + z * h
    logits = h_new @ params["w_out"].T + params["b_out"]
    return jax.nn.log_softmax(logits, axis=1), h_new.reshape(1, 1, H), attn_w


def reference_decode(tokens, hidden, encoder_outputs, params):
    h = hidden
    logps, attns = [], []
    for t in range(int(tokens.shape[0])):
        logp, h, attn = reference_forward(tokens[t:t + 1], h, encoder_outputs, params)
        logps.append(logp)
        attns.append(attn)
    return jnp.concatenate(logps, axis=0), h, jnp.concatenate(attns, axis=0)


def init_params(key, hidden_size, output_size):
    ks = jax.random.split(key, 10)
    s = 0.1
    return {
        "emb":    jax.random.normal(ks[0], (output_size, hidden_size), jnp.float32),
        "w_comb": s * jax.random.normal(ks[1], (hidden_size, 2 * hidden_size), jnp.float32),
        "b_comb": s * jax.random.normal(ks[2], (hidden_size,), jnp.float32),
        "w_ih":   s * jax.random.normal(ks[3], (3 * hidden_size, hidden_size), jnp.float32),
        "b_ih":   s * jax.random.normal(ks[4], (3 * hidden_size,), jnp.float32),
        "w_hh":   s * jax.random.normal(ks[5], (3 * hidden_size, hidden_size), jnp.float32),
        "b_hh":   s * jax.random.normal(ks[6], (3 * hidden_size,), jnp.float32),
        "w_out":  s * jax.random.normal(ks[7], (output_size, hidden_size), jnp.float32),
        "b_out":  s * jax.random.normal(ks[8], (output_size,), jnp.float32),
    }


if __name__ == "__main__":
    key = jax.random.PRNGKey(0)
    k_p, k_h, k_e = jax.random.split(key, 3)

    params = init_params(k_p, HIDDEN, VOCAB)
    prepped = prep_params(params)                                           # one-time prep
    hidden = jax.random.normal(k_h, (1, 1, HIDDEN), jnp.float32)            # (layers*dirs, 1, H)
    encoder_outputs = jax.random.normal(k_e, (ENC_LEN, 1, HIDDEN), jnp.float32)  # (L, 1, H)

    # --- single forward step (original module semantics) ---
    tok = jnp.array([3], dtype=jnp.int32)
    logp, h_new, attn_w = attn_decoder_forward(tok, hidden, encoder_outputs, prepped)
    jax.block_until_ready((logp, h_new, attn_w))
    r_logp, r_h, r_attn = reference_forward(tok, hidden, encoder_outputs, params)
    np.testing.assert_allclose(np.asarray(logp), np.asarray(r_logp), rtol=1e-2, atol=1e-2)
    np.testing.assert_allclose(np.asarray(h_new), np.asarray(r_h), rtol=1e-2, atol=1e-2)
    np.testing.assert_allclose(np.asarray(attn_w), np.asarray(r_attn), rtol=1e-2, atol=1e-2)

    # --- fused multi-step decode: whole loop inside one pallas_call ---
    tokens = jnp.array([3, 7, 0, 15, 9, 2, 11, 5], dtype=jnp.int32)
    logps, h_fin, attns = attn_decoder_decode(tokens, hidden, encoder_outputs, prepped)
    jax.block_until_ready((logps, h_fin, attns))
    rr_logps, rr_h, rr_attns = reference_decode(tokens, hidden, encoder_outputs, params)
    np.testing.assert_allclose(np.asarray(logps), np.asarray(rr_logps), rtol=1e-2, atol=1e-2)
    np.testing.assert_allclose(np.asarray(h_fin), np.asarray(rr_h), rtol=1e-2, atol=1e-2)
    np.testing.assert_allclose(np.asarray(attns), np.asarray(rr_attns), rtol=1e-2, atol=1e-2)

    print("KERNEL_OK")
</pallas_src>

<mosaic_0001>
module attributes {stable_mosaic.version = 11 : i64} {
  func.func @_attn_decoder_kernel(%arg0: i32, %arg1: memref<1xi32, #tpu.memory_space<smem>>, %arg2: memref<1x32xf32, #tpu.memory_space<vmem>>, %arg3: memref<16x32xf32, #tpu.memory_space<vmem>>, %arg4: memref<128x32xf32, #tpu.memory_space<vmem>>, %arg5: memref<1x128xf32, #tpu.memory_space<vmem>>, %arg6: memref<32x32xf32, #tpu.memory_space<vmem>>, %arg7: memref<32x32xf32, #tpu.memory_space<vmem>>, %arg8: memref<1x32xf32, #tpu.memory_space<vmem>>, %arg9: memref<3x32x32xf32, #tpu.memory_space<vmem>>, %arg10: memref<3x1x32xf32, #tpu.memory_space<vmem>>, %arg11: memref<3x32x32xf32, #tpu.memory_space<vmem>>, %arg12: memref<3x1x32xf32, #tpu.memory_space<vmem>>, %arg13: memref<32x128xf32, #tpu.memory_space<vmem>>, %arg14: memref<1x128xf32, #tpu.memory_space<vmem>>, %arg15: memref<1x1x128xf32, #tpu.memory_space<vmem>>, %arg16: memref<1x1x128xf32, #tpu.memory_space<vmem>>, %arg17: memref<1x32xf32, #tpu.memory_space<vmem>>) attributes {dimension_semantics = [#tpu.dimension_semantics<arbitrary>], iteration_bounds = array<i64: 1>, scalar_prefetch = 1 : i64, scratch_operands = 0 : i64, tpu.core_type = #tpu.core_type<tc>, window_params = [{pipeline_mode = #tpu.pipeline_mode<synchronous>, transform_indices = @transform_0, window_bounds = array<i64: 1, 32>}, {pipeline_mode = #tpu.pipeline_mode<synchronous>, transform_indices = @transform_1, window_bounds = array<i64: 16, 32>}, {pipeline_mode = #tpu.pipeline_mode<synchronous>, transform_indices = @transform_2, window_bounds = array<i64: 128, 32>}, {pipeline_mode = #tpu.pipeline_mode<synchronous>, transform_indices = @transform_3, window_bounds = array<i64: 1, 128>}, {pipeline_mode = #tpu.pipeline_mode<synchronous>, transform_indices = @transform_4, window_bounds = array<i64: 32, 32>}, {pipeline_mode = #tpu.pipeline_mode<synchronous>, transform_indices = @transform_5, window_bounds = array<i64: 32, 32>}, {pipeline_mode = #tpu.pipeline_mode<synchronous>, transform_indices = @transform_6, window_bounds = array<i64: 1, 32>}, {pipeline_mode = #tpu.pipeline_mode<synchronous>, transform_indices = @transform_7, window_bounds = array<i64: 3, 32, 32>}, {pipeline_mode = #tpu.pipeline_mode<synchronous>, transform_indices = @transform_8, window_bounds = array<i64: 3, 1, 32>}, {pipeline_mode = #tpu.pipeline_mode<synchronous>, transform_indices = @transform_9, window_bounds = array<i64: 3, 32, 32>}, {pipeline_mode = #tpu.pipeline_mode<synchronous>, transform_indices = @transform_10, window_bounds = array<i64: 3, 1, 32>}, {pipeline_mode = #tpu.pipeline_mode<synchronous>, transform_indices = @transform_11, window_bounds = array<i64: 32, 128>}, {pipeline_mode = #tpu.pipeline_mode<synchronous>, transform_indices = @transform_12, window_bounds = array<i64: 1, 128>}, {transform_indices = @transform_13, window_bounds = array<i64: 1, 1, 128>}, {transform_indices = @transform_14, window_bounds = array<i64: 1, 1, 128>}, {pipeline_mode = #tpu.pipeline_mode<synchronous>, transform_indices = @transform_15, window_bounds = array<i64: 1, 32>}]} {
    %c0_i32 = arith.constant 0 : i32
    %0 = arith.cmpi eq, %arg0, %c0_i32 : i32
    %1 = arith.extui %0 : i1 to i32
    %c0_i32_0 = arith.constant 0 : i32
    %2 = arith.cmpi ne, %1, %c0_i32_0 : i32
    scf.if %2 {
      %c0_77 = arith.constant 0 : index
      %c0_78 = arith.constant 0 : index
      %110 = vector.load %arg2[%c0_77, %c0_78] : memref<1x32xf32, #tpu.memory_space<vmem>>, vector<1x32xf32>
      %c0_79 = arith.constant 0 : index
      %c0_80 = arith.constant 0 : index
      %111 = vector.load %arg17[%c0_79, %c0_80] : memref<1x32xf32, #tpu.memory_space<vmem>>, vector<1x32xf32>
      tpu.vector_store %arg17[%c0_79, %c0_80], %110 {strides = array<i32>} : memref<1x32xf32, #tpu.memory_space<vmem>>, vector<1x32xf32>,
    } else {
    }
    %c0 = arith.constant 0 : index
    %c0_1 = arith.constant 0 : index
    %3 = vector.load %arg17[%c0, %c0_1] : memref<1x32xf32, #tpu.memory_space<vmem>>, vector<1x32xf32>
    %4 = arith.index_cast %arg0 : i32 to index
    %5 = memref.load %arg1[%4] : memref<1xi32, #tpu.memory_space<smem>>
    %6 = arith.index_cast %5 : i32 to index
    %c0_2 = arith.constant 0 : index
    %7 = vector.load %arg3[%6, %c0_2] : memref<16x32xf32, #tpu.memory_space<vmem>>, vector<1x32xf32>
    %c0_3 = arith.constant 0 : index
    %c0_4 = arith.constant 0 : index
    %8 = vector.load %arg4[%c0_3, %c0_4] : memref<128x32xf32, #tpu.memory_space<vmem>>, vector<128x32xf32>
    %cst = arith.constant dense<0.000000e+00> : vector<1x128xf32>
    %9 = tpu.matmul %3, %8, %cst {dimension_numbers = #tpu.dot_dimension_numbers<[1], [1], [0], [0], [0, 0, 1, 0], [], []>} : vector<1x32xf32>, vector<128x32xf32>, vector<1x128xf32> -> vector<1x128xf32>
    %c0_5 = arith.constant 0 : index
    %c0_6 = arith.constant 0 : index
    %10 = vector.load %arg5[%c0_5, %c0_6] : memref<1x128xf32, #tpu.memory_space<vmem>>, vector<1x128xf32>
    %11 = arith.addf %9, %10 : vector<1x128xf32>
    %cst_7 = arith.constant dense<0xFF800000> : vector<1xf32>
    %12 = vector.multi_reduction <maximumf>, %11, %cst_7 [1] : vector<1x128xf32> to vector<1xf32>
    %13 = vector.shape_cast %12 : vector<1xf32> to vector<1x1xf32>
    %14 = vector.broadcast %13 : vector<1x1xf32> to vector<1x128xf32>
    %15 = arith.subf %11, %14 : vector<1x128xf32>
    %16 = math.exp %15 : vector<1x128xf32>
    %cst_8 = arith.constant dense<0.000000e+00> : vector<1xf32>
    %17 = vector.multi_reduction <add>, %16, %cst_8 [1] : vector<1x128xf32> to vector<1xf32>
    %18 = vector.shape_cast %17 : vector<1xf32> to vector<1x1xf32>
    %19 = tpu.reciprocal %18 {approx = true} : vector<1x1xf32> -> vector<1x1xf32>
    %20 = vector.broadcast %19 : vector<1x1xf32> to vector<1x128xf32>
    %21 = arith.mulf %16, %20 : vector<1x128xf32>
    %c0_9 = arith.constant 0 : index
    %c0_10 = arith.constant 0 : index
    %c0_11 = arith.constant 0 : index
    %22 = vector.load %arg16[%c0_9, %c0_10, %c0_11] : memref<1x1x128xf32, #tpu.memory_space<vmem>>, vector<1x1x128xf32>
    %23 = vector.shape_cast %22 : vector<1x1x128xf32> to vector<1x128xf32>
    %24 = vector.shape_cast %21 : vector<1x128xf32> to vector<1x1x128xf32>
    tpu.vector_store %arg16[%c0_9, %c0_10, %c0_11], %24 {strides = array<i32>} : memref<1x1x128xf32, #tpu.memory_space<vmem>>, vector<1x1x128xf32>,
    %cst_12 = arith.constant dense<0.000000e+00> : vector<1x32xf32>
    %25 = tpu.matmul %21, %8, %cst_12 {dimension_numbers = #tpu.dot_dimension_numbers<[1], [0], [0], [1], [0, 0, 1, 1], [], []>} : vector<1x128xf32>, vector<128x32xf32>, vector<1x32xf32> -> vector<1x32xf32>
    %c0_13 = arith.constant 0 : index
    %c0_14 = arith.constant 0 : index
    %26 = vector.load %arg6[%c0_13, %c0_14] : memref<32x32xf32, #tpu.memory_space<vmem>>, vector<32x32xf32>
    %cst_15 = arith.constant dense<0.000000e+00> : vector<1x32xf32>
    %27 = tpu.matmul %7, %26, %cst_15 {dimension_numbers = #tpu.dot_dimension_numbers<[1], [0], [0], [1], [0, 0, 1, 1], [], []>} : vector<1x32xf32>, vector<32x32xf32>, vector<1x32xf32> -> vector<1x32xf32>
    %c0_16 = arith.constant 0 : index
    %c0_17 = arith.constant 0 : index
    %28 = vector.load %arg7[%c0_16, %c0_17] : memref<32x32xf32, #tpu.memory_space<vmem>>, vector<32x32xf32>
    %cst_18 = arith.constant dense<0.000000e+00> : vector<1x32xf32>
    %29 = tpu.matmul %25, %28, %cst_18 {dimension_numbers = #tpu.dot_dimension_numbers<[1], [0], [0], [1], [0, 0, 1, 1], [], []>} : vector<1x32xf32>, vector<32x32xf32>, vector<1x32xf32> -> vector<1x32xf32>
    %30 = arith.addf %27, %29 : vector<1x32xf32>
    %c0_19 = arith.constant 0 : index
    %c0_20 = arith.constant 0 : index
    %31 = vector.load %arg8[%c0_19, %c0_20] : memref<1x32xf32, #tpu.memory_space<vmem>>, vector<1x32xf32>
    %32 = arith.addf %30, %31 : vector<1x32xf32>
    %cst_21 = arith.constant 0.000000e+00 : f32
    %33 = vector.broadcast %cst_21 : f32 to vector<1x32xf32>
    %34 = arith.maximumf %32, %33 : vector<1x32xf32>
    %c0_22 = arith.constant 0 : index
    %c0_23 = arith.constant 0 : index
    %c0_24 = arith.constant 0 : index
    %35 = vector.load %arg9[%c0_22, %c0_23, %c0_24] : memref<3x32x32xf32, #tpu.memory_space<vmem>>, vector<1x32x32xf32>
    %36 = vector.shape_cast %35 : vector<1x32x32xf32> to vector<32x32xf32>
    %cst_25 = arith.constant dense<0.000000e+00> : vector<1x32xf32>
    %37 = tpu.matmul %34, %36, %cst_25 {dimension_numbers = #tpu.dot_dimension_numbers<[1], [0], [0], [1], [0, 0, 1, 1], [], []>} : vector<1x32xf32>, vector<32x32xf32>, vector<1x32xf32> -> vector<1x32xf32>
    %c0_26 = arith.constant 0 : index
    %c0_27 = arith.constant 0 : index
    %c0_28 = arith.constant 0 : index
    %38 = vector.load %arg10[%c0_26, %c0_27, %c0_28] : memref<3x1x32xf32, #tpu.memory_space<vmem>>, vector<1x1x32xf32>
    %39 = vector.shape_cast %38 : vector<1x1x32xf32> to vector<1x32xf32>
    %40 = arith.addf %37, %39 : vector<1x32xf32>
    %c0_29 = arith.constant 0 : index
    %c0_30 = arith.constant 0 : index
    %c0_31 = arith.constant 0 : index
    %41 = vector.load %arg11[%c0_29, %c0_30, %c0_31] : memref<3x32x32xf32, #tpu.memory_space<vmem>>, vector<1x32x32xf32>
    %42 = vector.shape_cast %41 : vector<1x32x32xf32> to vector<32x32xf32>
    %cst_32 = arith.constant dense<0.000000e+00> : vector<1x32xf32>
    %43 = tpu.matmul %3, %42, %cst_32 {dimension_numbers = #tpu.dot_dimension_numbers<[1], [0], [0], [1], [0, 0, 1, 1], [], []>} : vector<1x32xf32>, vector<32x32xf32>, vector<1x32xf32> -> vector<1x32xf32>
    %44 = arith.addf %40, %43 : vector<1x32xf32>
    %c0_33 = arith.constant 0 : index
    %c0_34 = arith.constant 0 : index
    %c0_35 = arith.constant 0 : index
    %45 = vector.load %arg12[%c0_33, %c0_34, %c0_35] : memref<3x1x32xf32, #tpu.memory_space<vmem>>, vector<1x1x32xf32>
    %46 = vector.shape_cast %45 : vector<1x1x32xf32> to vector<1x32xf32>
    %47 = arith.addf %44, %46 : vector<1x32xf32>
    %48 = arith.negf %47 : vector<1x32xf32>
    %49 = math.exp %48 : vector<1x32xf32>
    %cst_36 = arith.constant 1.000000e+00 : f32
    %50 = vector.broadcast %cst_36 : f32 to vector<1x32xf32>
    %51 = arith.addf %50, %49 : vector<1x32xf32>
    %52 = arith.divf %50, %51 : vector<1x32xf32>
    %c1 = arith.constant 1 : index
    %c0_37 = arith.constant 0 : index
    %c0_38 = arith.constant 0 : index
    %53 = vector.load %arg9[%c1, %c0_37, %c0_38] : memref<3x32x32xf32, #tpu.memory_space<vmem>>, vector<1x32x32xf32>
    %54 = vector.shape_cast %53 : vector<1x32x32xf32> to vector<32x32xf32>
    %cst_39 = arith.constant dense<0.000000e+00> : vector<1x32xf32>
    %55 = tpu.matmul %34, %54, %cst_39 {dimension_numbers = #tpu.dot_dimension_numbers<[1], [0], [0], [1], [0, 0, 1, 1], [], []>} : vector<1x32xf32>, vector<32x32xf32>, vector<1x32xf32> -> vector<1x32xf32>
    %c1_40 = arith.constant 1 : index
    %c0_41 = arith.constant 0 : index
    %c0_42 = arith.constant 0 : index
    %56 = vector.load %arg10[%c1_40, %c0_41, %c0_42] : memref<3x1x32xf32, #tpu.memory_space<vmem>>, vector<1x1x32xf32>
    %57 = vector.shape_cast %56 : vector<1x1x32xf32> to vector<1x32xf32>
    %58 = arith.addf %55, %57 : vector<1x32xf32>
    %c1_43 = arith.constant 1 : index
    %c0_44 = arith.constant 0 : index
    %c0_45 = arith.constant 0 : index
    %59 = vector.load %arg11[%c1_43, %c0_44, %c0_45] : memref<3x32x32xf32, #tpu.memory_space<vmem>>, vector<1x32x32xf32>
    %60 = vector.shape_cast %59 : vector<1x32x32xf32> to vector<32x32xf32>
    %cst_46 = arith.constant dense<0.000000e+00> : vector<1x32xf32>
    %61 = tpu.matmul %3, %60, %cst_46 {dimension_numbers = #tpu.dot_dimension_numbers<[1], [0], [0], [1], [0, 0, 1, 1], [], []>} : vector<1x32xf32>, vector<32x32xf32>, vector<1x32xf32> -> vector<1x32xf32>
    %62 = arith.addf %58, %61 : vector<1x32xf32>
    %c1_47 = arith.constant 1 : index
    %c0_48 = arith.constant 0 : index
    %c0_49 = arith.constant 0 : index
    %63 = vector.load %arg12[%c1_47, %c0_48, %c0_49] : memref<3x1x32xf32, #tpu.memory_space<vmem>>, vector<1x1x32xf32>
    %64 = vector.shape_cast %63 : vector<1x1x32xf32> to vector<1x32xf32>
    %65 = arith.addf %62, %64 : vector<1x32xf32>
    %66 = arith.negf %65 : vector<1x32xf32>
    %67 = math.exp %66 : vector<1x32xf32>
    %cst_50 = arith.constant 1.000000e+00 : f32
    %68 = vector.broadcast %cst_50 : f32 to vector<1x32xf32>
    %69 = arith.addf %68, %67 : vector<1x32xf32>
    %70 = arith.divf %68, %69 : vector<1x32xf32>
    %c2 = arith.constant 2 : index
    %c0_51 = arith.constant 0 : index
    %c0_52 = arith.constant 0 : index
    %71 = vector.load %arg11[%c2, %c0_51, %c0_52] : memref<3x32x32xf32, #tpu.memory_space<vmem>>, vector<1x32x32xf32>
    %72 = vector.shape_cast %71 : vector<1x32x32xf32> to vector<32x32xf32>
    %cst_53 = arith.constant dense<0.000000e+00> : vector<1x32xf32>
    %73 = tpu.matmul %3, %72, %cst_53 {dimension_numbers = #tpu.dot_dimension_numbers<[1], [0], [0], [1], [0, 0, 1, 1], [], []>} : vector<1x32xf32>, vector<32x32xf32>, vector<1x32xf32> -> vector<1x32xf32>
    %c2_54 = arith.constant 2 : index
    %c0_55 = arith.constant 0 : index
    %c0_56 = arith.constant 0 : index
    %74 = vector.load %arg12[%c2_54, %c0_55, %c0_56] : memref<3x1x32xf32, #tpu.memory_space<vmem>>, vector<1x1x32xf32>
    %75 = vector.shape_cast %74 : vector<1x1x32xf32> to vector<1x32xf32>
    %76 = arith.addf %73, %75 : vector<1x32xf32>
    %c2_57 = arith.constant 2 : index
    %c0_58 = arith.constant 0 : index
    %c0_59 = arith.constant 0 : index
    %77 = vector.load %arg9[%c2_57, %c0_58, %c0_59] : memref<3x32x32xf32, #tpu.memory_space<vmem>>, vector<1x32x32xf32>
    %78 = vector.shape_cast %77 : vector<1x32x32xf32> to vector<32x32xf32>
    %cst_60 = arith.constant dense<0.000000e+00> : vector<1x32xf32>
    %79 = tpu.matmul %34, %78, %cst_60 {dimension_numbers = #tpu.dot_dimension_numbers<[1], [0], [0], [1], [0, 0, 1, 1], [], []>} : vector<1x32xf32>, vector<32x32xf32>, vector<1x32xf32> -> vector<1x32xf32>
    %c2_61 = arith.constant 2 : index
    %c0_62 = arith.constant 0 : index
    %c0_63 = arith.constant 0 : index
    %80 = vector.load %arg10[%c2_61, %c0_62, %c0_63] : memref<3x1x32xf32, #tpu.memory_space<vmem>>, vector<1x1x32xf32>
    %81 = vector.shape_cast %80 : vector<1x1x32xf32> to vector<1x32xf32>
    %82 = arith.addf %79, %81 : vector<1x32xf32>
    %83 = arith.mulf %52, %76 : vector<1x32xf32>
    %84 = arith.addf %82, %83 : vector<1x32xf32>
    %85 = math.tanh %84 : vector<1x32xf32>
    %cst_64 = arith.constant 1.000000e+00 : f32
    %86 = vector.broadcast %cst_64 : f32 to vector<1x32xf32>
    %87 = arith.subf %86, %70 : vector<1x32xf32>
    %88 = arith.mulf %87, %85 : vector<1x32xf32>
    %89 = arith.mulf %70, %3 : vector<1x32xf32>
    %90 = arith.addf %88, %89 : vector<1x32xf32>
    %c0_65 = arith.constant 0 : index
    %c0_66 = arith.constant 0 : index
    %91 = vector.load %arg17[%c0_65, %c0_66] : memref<1x32xf32, #tpu.memory_space<vmem>>, vector<1x32xf32>
    tpu.vector_store %arg17[%c0_65, %c0_66], %90 {strides = array<i32>} : memref<1x32xf32, #tpu.memory_space<vmem>>, vector<1x32xf32>,
    %c0_67 = arith.constant 0 : index
    %c0_68 = arith.constant 0 : index
    %92 = vector.load %arg13[%c0_67, %c0_68] : memref<32x128xf32, #tpu.memory_space<vmem>>, vector<32x128xf32>
    %cst_69 = arith.constant dense<0.000000e+00> : vector<1x128xf32>
    %93 = tpu.matmul %90, %92, %cst_69 {dimension_numbers = #tpu.dot_dimension_numbers<[1], [0], [0], [1], [0, 0, 1, 1], [], []>} : vector<1x32xf32>, vector<32x128xf32>, vector<1x128xf32> -> vector<1x128xf32>
    %c0_70 = arith.constant 0 : index
    %c0_71 = arith.constant 0 : index
    %94 = vector.load %arg14[%c0_70, %c0_71] : memref<1x128xf32, #tpu.memory_space<vmem>>, vector<1x128xf32>
    %95 = arith.addf %93, %94 : vector<1x128xf32>
    %cst_72 = arith.constant dense<0xFF800000> : vector<1xf32>
    %96 = vector.multi_reduction <maximumf>, %95, %cst_72 [1] : vector<1x128xf32> to vector<1xf32>
    %97 = vector.shape_cast %96 : vector<1xf32> to vector<1x1xf32>
    %98 = vector.broadcast %97 : vector<1x1xf32> to vector<1x128xf32>
    %99 = arith.subf %95, %98 : vector<1x128xf32>
    %100 = math.exp %99 : vector<1x128xf32>
    %cst_73 = arith.constant dense<0.000000e+00> : vector<1xf32>
    %101 = vector.multi_reduction <add>, %100, %cst_73 [1] : vector<1x128xf32> to vector<1xf32>
    %102 = vector.shape_cast %101 : vector<1xf32> to vector<1x1xf32>
    %103 = math.log %102 : vector<1x1xf32>
    %104 = arith.addf %97, %103 : vector<1x1xf32>
    %105 = vector.broadcast %104 : vector<1x1xf32> to vector<1x128xf32>
    %106 = arith.subf %95, %105 : vector<1x128xf32>
    %c0_74 = arith.constant 0 : index
    %c0_75 = arith.constant 0 : index
    %c0_76 = arith.constant 0 : index
    %107 = vector.load %arg15[%c0_74, %c0_75, %c0_76] : memref<1x1x128xf32, #tpu.memory_space<vmem>>, vector<1x1x128xf32>
    %108 = vector.shape_cast %107 : vector<1x1x128xf32> to vector<1x128xf32>
    %109 = vector.shape_cast %106 : vector<1x128xf32> to vector<1x1x128xf32>
    tpu.vector_store %arg15[%c0_74, %c0_75, %c0_76], %109 {strides = array<i32>} : memref<1x1x128xf32, #tpu.memory_space<vmem>>, vector<1x1x128xf32>,
    return
  }
  func.func @transform_0(%arg0: i32, %arg1: memref<1xi32, #tpu.memory_space<smem>>) -> (i32, i32) {
    %c0_i32 = arith.constant 0 : i32
    %c0_i32_0 = arith.constant 0 : i32
    %c0_i32_1 = arith.constant 0 : i32
    return %c0_i32, %c0_i32_0 : i32, i32
  }
  func.func @transform_1(%arg0: i32, %arg1: memref<1xi32, #tpu.memory_space<smem>>) -> (i32, i32) {
    %c0_i32 = arith.constant 0 : i32
    %c0_i32_0 = arith.constant 0 : i32
    %c0_i32_1 = arith.constant 0 : i32
    return %c0_i32, %c0_i32_0 : i32, i32
  }
  func.func @transform_2(%arg0: i32, %arg1: memref<1xi32, #tpu.memory_space<smem>>) -> (i32, i32) {
    %c0_i32 = arith.constant 0 : i32
    %c0_i32_0 = arith.constant 0 : i32
    %c0_i32_1 = arith.constant 0 : i32
    return %c0_i32, %c0_i32_0 : i32, i32
  }
  func.func @transform_3(%arg0: i32, %arg1: memref<1xi32, #tpu.memory_space<smem>>) -> (i32, i32) {
    %c0_i32 = arith.constant 0 : i32
    %c0_i32_0 = arith.constant 0 : i32
    %c0_i32_1 = arith.constant 0 : i32
    return %c0_i32, %c0_i32_0 : i32, i32
  }
  func.func @transform_4(%arg0: i32, %arg1: memref<1xi32, #tpu.memory_space<smem>>) -> (i32, i32) {
    %c0_i32 = arith.constant 0 : i32
    %c0_i32_0 = arith.constant 0 : i32
    %c0_i32_1 = arith.constant 0 : i32
    return %c0_i32, %c0_i32_0 : i32, i32
  }
  func.func @transform_5(%arg0: i32, %arg1: memref<1xi32, #tpu.memory_space<smem>>) -> (i32, i32) {
    %c0_i32 = arith.constant 0 : i32
    %c0_i32_0 = arith.constant 0 : i32
    %c0_i32_1 = arith.constant 0 : i32
    return %c0_i32, %c0_i32_0 : i32, i32
  }
  func.func @transform_6(%arg0: i32, %arg1: memref<1xi32, #tpu.memory_space<smem>>) -> (i32, i32) {
    %c0_i32 = arith.constant 0 : i32
    %c0_i32_0 = arith.constant 0 : i32
    %c0_i32_1 = arith.constant 0 : i32
    return %c0_i32, %c0_i32_0 : i32, i32
  }
  func.func @transform_7(%arg0: i32, %arg1: memref<1xi32, #tpu.memory_space<smem>>) -> (i32, i32, i32) {
    %c0_i32 = arith.constant 0 : i32
    %c0_i32_0 = arith.constant 0 : i32
    %c0_i32_1 = arith.constant 0 : i32
    %c0_i32_2 = arith.constant 0 : i32
    return %c0_i32, %c0_i32_0, %c0_i32_1 : i32, i32, i32
  }
  func.func @transform_8(%arg0: i32, %arg1: memref<1xi32, #tpu.memory_space<smem>>) -> (i32, i32, i32) {
    %c0_i32 = arith.constant 0 : i32
    %c0_i32_0 = arith.constant 0 : i32
    %c0_i32_1 = arith.constant 0 : i32
    %c0_i32_2 = arith.constant 0 : i32
    return %c0_i32, %c0_i32_0, %c0_i32_1 : i32, i32, i32
  }
  func.func @transform_9(%arg0: i32, %arg1: memref<1xi32, #tpu.memory_space<smem>>) -> (i32, i32, i32) {
    %c0_i32 = arith.constant 0 : i32
    %c0_i32_0 = arith.constant 0 : i32
    %c0_i32_1 = arith.constant 0 : i32
    %c0_i32_2 = arith.constant 0 : i32
    return %c0_i32, %c0_i32_0, %c0_i32_1 : i32, i32, i32
  }
  func.func @transform_10(%arg0: i32, %arg1: memref<1xi32, #tpu.memory_space<smem>>) -> (i32, i32, i32) {
    %c0_i32 = arith.constant 0 : i32
    %c0_i32_0 = arith.constant 0 : i32
    %c0_i32_1 = arith.constant 0 : i32
    %c0_i32_2 = arith.constant 0 : i32
    return %c0_i32, %c0_i32_0, %c0_i32_1 : i32, i32, i32
  }
  func.func @transform_11(%arg0: i32, %arg1: memref<1xi32, #tpu.memory_space<smem>>) -> (i32, i32) {
    %c0_i32 = arith.constant 0 : i32
    %c0_i32_0 = arith.constant 0 : i32
    %c0_i32_1 = arith.constant 0 : i32
    return %c0_i32, %c0_i32_0 : i32, i32
  }
  func.func @transform_12(%arg0: i32, %arg1: memref<1xi32, #tpu.memory_space<smem>>) -> (i32, i32) {
    %c0_i32 = arith.constant 0 : i32
    %c0_i32_0 = arith.constant 0 : i32
    %c0_i32_1 = arith.constant 0 : i32
    return %c0_i32, %c0_i32_0 : i32, i32
  }
  func.func @transform_13(%arg0: i32, %arg1: memref<1xi32, #tpu.memory_space<smem>>) -> (i32, i32, i32) {
    %c0_i32 = arith.constant 0 : i32
    %c0_i32_0 = arith.constant 0 : i32
    %c0_i32_1 = arith.constant 0 : i32
    return %arg0, %c0_i32, %c0_i32_0 : i32, i32, i32
  }
  func.func @transform_14(%arg0: i32, %arg1: memref<1xi32, #tpu.memory_space<smem>>) -> (i32, i32, i32) {
    %c0_i32 = arith.constant 0 : i32
    %c0_i32_0 = arith.constant 0 : i32
    %c0_i32_1 = arith.constant 0 : i32
    return %arg0, %c0_i32, %c0_i32_0 : i32, i32, i32
  }
  func.func @transform_15(%arg0: i32, %arg1: memref<1xi32, #tpu.memory_space<smem>>) -> (i32, i32) {
    %c0_i32 = arith.constant 0 : i32
    %c0_i32_0 = arith.constant 0 : i32
    %c0_i32_1 = arith.constant 0 : i32
    return %c0_i32, %c0_i32_0 : i32, i32
  }
}

</mosaic_0001>

<bundles_post_ra>
// kernel: tpu_custom_call.1
= control target key start
LH: loop header
LB: loop body
LE: loop exit
PB: predicated region body
PF: predicated region fallthrough
CT: control target
= control target key end

     0   :  { %s1144_s0 = inlined_call_operand.<no memory space> [shape: s32[1], index: 0, kind: input, shape index: {}]   ;;  %s1145_s1 = inlined_call_operand.vmem [shape: f32[1,32], index: 1, kind: input, shape index: {}]   ;;  %s1146_s2 = inlined_call_operand.hbm [shape: f32[16,32], index: 2, kind: input, shape index: {}]   ;;  %s1147_s3 = inlined_call_operand.vmem [shape: f32[128,32], index: 3, kind: input, shape index: {}]   ;;  %s1148_s4 = inlined_call_operand.vmem [shape: f32[1,128], index: 4, kind: input, shape index: {}]   ;;  %s1149_s5 = inlined_call_operand.vmem [shape: f32[32,32], index: 5, kind: input, shape index: {}]   ;;  %s1150_s6 = inlined_call_operand.vmem [shape: f32[32,32], index: 6, kind: input, shape index: {}]   ;;  %s1151_s7 = inlined_call_operand.hbm [shape: f32[1,32], index: 7, kind: input, shape index: {}]   ;;  %s1152_s8 = inlined_call_operand.vmem [shape: f32[3,32,32], index: 8, kind: input, shape index: {}]   ;;  %s1153_s9 = inlined_call_operand.vmem [shape: f32[3,1,32], index: 9, kind: input, shape index: {}]   ;;  %s1154_s10 = inlined_call_operand.hbm [shape: f32[3,32,32], index: 10, kind: input, shape index: {}]   ;;  %s1155_s11 = inlined_call_operand.vmem [shape: f32[3,1,32], index: 11, kind: input, shape index: {}]   ;;  %s1156_s12 = inlined_call_operand.hbm [shape: f32[32,128], index: 12, kind: input, shape index: {}]   ;;  %s1157_s13 = inlined_call_operand.vmem [shape: f32[1,128], index: 13, kind: input, shape index: {}]   ;;  %s1158_s14 = inlined_call_operand.hbm [shape: f32[1,1,128], index: 14, kind: output, shape index: {0}]   ;;  %s1159_s15 = inlined_call_operand.hbm [shape: f32[1,1,128], index: 15, kind: output, shape index: {1}]   ;;  %s1160_s16 = inlined_call_operand.hbm [shape: f32[1,32], index: 16, kind: output, shape index: {2}]  }
   0x1   :  { %1161 = sst [smem:[#allocation21_spill]] %s1144_s0 }
   0x2   :  { %23 = vsyncpa [#allocation5], 0 }
   0x3   :  { %24 = vsyncpa [#allocation8], 0 }
   0x4   :  { %25 = vsyncpa [#allocation11], 0 }
   0x5   :  { %26 = vsyncpa [#allocation6], 0  ;;  %s56_s23 = sshll.u32 %s1151_s7, 4  ;;  %s57_s23 = int_to_ptr.hbm [resolvable:$true] %s56_s23 }
   0x6   :  { %27 = vsyncpa [#allocation14], 0  ;;  %s852_s24 = smov [#allocation7]   ;;  %s34_s28 = sshll.u32 %s1146_s2, 4  ;;  %s35_s28 = int_to_ptr.hbm [resolvable:$true] %s34_s28 }
   0x7   :  { %s58_s25 = sshll.u32 %s852_s24, 4  ;;  %s853_s29 = smov [#allocation4]   ;;  %s59_s25 = int_to_ptr.vmem [resolvable:$true] %s58_s25 }
   0x8   :  { %61 = dma.hbm_to_vmem [thread:$0]  %s57_s23, 16, %s59_s25, [#allocation8]  }
   0x9   :  { %s36_s30 = sshll.u32 %s853_s29, 4  ;;  %s854_s0 = smov 128   ;;  %s37_s30 = int_to_ptr.vmem [resolvable:$true] %s36_s30 }
   0xa   :  { %s855_s17 = smov 8   ;;  %s70_s7 = sshll.u32 %s1154_s10, 4  ;;  %s71_s7 = int_to_ptr.hbm [resolvable:$true] %s70_s7 }
   0xb   :  { %42 = dma.hbm_to_vmem [thread:$0]  %s35_s28, 256, %s37_s30, [#allocation5], %s854_s0, %s854_s0, %s855_s17  }
   0xc   :  { %s856_s20 = smov [#allocation9]   ;;  %s85_s2 = sshll.u32 %s1156_s12, 4  ;;  %s86_s2 = int_to_ptr.hbm [resolvable:$true] %s85_s2 }
   0xd   :  { %s72_s21 = sshll.u32 %s856_s20, 4  ;;  %s857_s23 = smov [#allocation10]   ;;  %s73_s21 = int_to_ptr.vmem [resolvable:$true] %s72_s21 }
   0xe   :  { %78 = dma.hbm_to_vmem [thread:$0]  %s71_s7, 1536, %s73_s21, [#allocation8], %s854_s0, %s854_s0, %s855_s17  }
   0xf   :  { %s87_s25 = sshll.u32 %s857_s23, 4  ;;  %s88_s25 = int_to_ptr.vmem [resolvable:$true] %s87_s25 }
  0x10   :  { %93 = dma.hbm_to_vmem [thread:$0]  %s86_s2, 512, %s88_s25, [#allocation11], %s854_s0, %s854_s0, %s855_s17  }
  0x11   :  { %842 = dma.done.wait [#allocation5], 256  }
  0x12   :  { %843 = vsyncadd [#allocation5], 4294967040 }
  0x13   :  { %844 = dma.done.wait [#allocation8], 1552  }
  0x14   :  { %845 = vsyncadd [#allocation8], 4294965744 }
  0x15   :  { %846 = dma.done.wait [#allocation11], 512  }
  0x16   :  { %847 = vsyncadd [#allocation11], 4294966784  ;;  %vm140_vm0 = vcmask 261120   ;;  %v138_v0 = vld [vmem:[%s1147_s3 + $0x78] sm:$0xff]  ;;  %v137_v1 = vld [vmem:[%s1147_s3 + $0x70] sm:$0xff]  ;;  %vm117_vm1 = vcmask 253952  }
  0x17   :  { %607 = vmatpush.xpose.msk.msra.mxu0 %vm140_vm0, %v138_v0  ;;  %225 = vmatpush.msra.mxu1 %v138_v0  ;;  %v136_v2 = vld [vmem:[%s1147_s3 + $0x68] sm:$0xff]  ;;  %v135_v3 = vld [vmem:[%s1147_s3 + $0x60] sm:$0xff]  ;;  %v134_v4 = vld [vmem:[%s1147_s3 + $0x58] sm:$0xff]  ;;  %vm212_vm2 = vcmask 1040384   ;;  %s574_s28 = sshll.u32 %s1159_s15, 4  ;;  %s858_s29 = smov [#allocation13]   ;;  %s575_s28 = int_to_ptr.hbm [resolvable:$true] %s574_s28 }
  0x18   :  { %v133_v5 = vld [vmem:[%s1147_s3 + $0x50] sm:$0xff]  ;;  %v132_v6 = vld [vmem:[%s1147_s3 + $0x48] sm:$0xff]  ;;  %v131_v7 = vld [vmem:[%s1147_s3 + $0x40] sm:$0xff]  ;;  %s572_s30 = sshll.u32 %s858_s29, 4  ;;  %s585_s17 = sshll.u32 %s1160_s16, 4  ;;  %s573_s30 = int_to_ptr.vmem [resolvable:$true] %s572_s30  ;;  %s586_s17 = int_to_ptr.hbm [resolvable:$true] %s585_s17 }
  0x19   :  { %226 = vmatpush.msra.mxu1 %v137_v1  ;;  %v130_v8 = vld [vmem:[%s1147_s3 + $0x38] sm:$0xff]  ;;  %v129_v9 = vld [vmem:[%s1147_s3 + $0x30] sm:$0xff]  ;;  %v128_v10 = vld [vmem:[%s1147_s3 + $0x28] sm:$0xff]  ;;  %s859_s18 = smov [#allocation15]   ;;  %s860_s15 = smov [#allocation12]  }
  0x1a   :  { %v127_v11 = vld [vmem:[%s1147_s3 + $0x20] sm:$0xff]  ;;  %v126_v13 = vld [vmem:[%s1147_s3 + $0x18] sm:$0xff]  ;;  %v125_v14 = vld [vmem:[%s1147_s3 + $0x10] sm:$0xff]  ;;  %s583_s19 = sshll.u32 %s859_s18, 4  ;;  %s561_s7 = sshll.u32 %s860_s15, 4  ;;  %s584_s19 = int_to_ptr.vmem [resolvable:$true] %s583_s19  ;;  %s562_s7 = int_to_ptr.vmem [resolvable:$true] %s561_s7 }
  0x1b   :  { %608 = vmatpush.xpose.msk.msra.mxu0 %vm140_vm0, %v137_v1  ;;  %227 = vmatpush.msra.mxu1 %v136_v2  ;;  %v116_v12 = vld [vmem:[%s1145_s1] sm:$0x1]  ;;  %v124_v15 = vld [vmem:[%s1147_s3 + $0x8] sm:$0xff]  ;;  %v252_v27 = vld [vmem:[%s1150_s6 + $0x18] sm:$0xff]  ;;  %s1162_s1 = sld [smem:[#allocation21_spill]] }
  0x1c   :  { %118 = vst.msk [vmem:[#allocation15] sm:$0x1] %vm117_vm1, %v116_v12  ;;  %v123_v16 = vld [vmem:[%s1147_s3] sm:$0xff]  ;;  %v248_v28 = vld [vmem:[%s1149_s5 + $0x18] sm:$0xff]  ;;  %v251_v29 = vld [vmem:[%s1150_s6 + $0x10] sm:$0xff]  ;;  %268 = vmatpush.msra.mxu2 %v252_v27 }
  0x1d   :  { %228 = vmatpush.msra.mxu1 %v135_v3  ;;  %v139_v18 = vld [vmem:[%s1148_s4] sm:$0x1]  ;;  %291 = vmatpush.msra.mxu3 %v248_v28  ;;  %v247_v30 = vld [vmem:[%s1149_s5 + $0x10] sm:$0xff]  ;;  %v250_v31 = vld [vmem:[%s1150_s6 + $0x8] sm:$0xff] }
  0x1e   :  { %v246_v32 = vld [vmem:[%s1149_s5 + $0x8] sm:$0xff]  ;;  %269 = vmatpush.msra.mxu2 %v251_v29  ;;  %v249_v36 = vld [vmem:[%s1150_s6] sm:$0xff]  ;;  %v305_v42 = vld [vmem:[%s1152_s8 + $0x18] sm:$0xff] }
  0x1f   :  { %609 = vmatpush.xpose.msk.msra.mxu0 %vm140_vm0, %v136_v2  ;;  %229 = vmatpush.msra.mxu1 %v134_v4  ;;  %v245_v37 = vld [vmem:[%s1149_s5] sm:$0xff]  ;;  %v333_v39 = vld [vmem:[#allocation9 + $0x18] sm:$0xff]  ;;  %v330_v43 = vld [vmem:[#allocation9] sm:$0xff] }
  0x20   :  { %292 = vmatpush.msra.mxu3 %v247_v30  ;;  %270 = vmatpush.msra.mxu2 %v250_v31  ;;  %v332_v40 = vld [vmem:[#allocation9 + $0x10] sm:$0xff]  ;;  %v331_v41 = vld [vmem:[#allocation9 + $0x8] sm:$0xff]  ;;  %v407_v44 = vld [vmem:[#allocation9 + $0x38] sm:$0xff] }
  0x21   :  { %230 = vmatpush.msra.mxu1 %v133_v5  ;;  %s121_s21 = scalar_lea.vmem [#allocation4], %s1162_s1  ;;  %v406_v45 = vld [vmem:[#allocation9 + $0x30] sm:$0xff]  ;;  %v405_v46 = vld [vmem:[#allocation9 + $0x28] sm:$0xff]  ;;  %v404_v47 = vld [vmem:[#allocation9 + $0x20] sm:$0xff] }
  0x22   :  { %293 = vmatpush.msra.mxu3 %v246_v32  ;;  %271 = vmatpush.msra.mxu2 %v249_v36  ;;  %v122_v38 = vld [vmem:[%s121_s21] sm:$0x1]  ;;  %v643_v49 = vld [vmem:[%s1152_s8 + $0x58] sm:$0xff]  ;;  %v304_v50 = vld [vmem:[%s1152_s8 + $0x10] sm:$0xff]  ;;  %s563_s21 = sshll.u32 %s1158_s14, 4  ;;  %s564_s21 = int_to_ptr.hbm [resolvable:$true] %s563_s21 }
  0x23   :  { %610 = vmatpush.xpose.msk.msra.mxu0 %vm140_vm0, %v135_v3  ;;  %231 = vmatpush.msra.mxu1 %v132_v6  ;;  %v1026_v17 = vld [vmem:[#allocation15] sm:$0x1]  ;;  %v303_v52 = vld [vmem:[%s1152_s8 + $0x8] sm:$0xff]  ;;  %v302_v54 = vld [vmem:[%s1152_s8] sm:$0xff] }
  0x24   :  { %294 = vmatpush.msra.mxu3 %v245_v37  ;;  %322 = vmatpush.msrb.mxu2 %v305_v42  ;;  %v642_v51 = vld [vmem:[%s1152_s8 + $0x50] sm:$0xff]  ;;  %v641_v53 = vld [vmem:[%s1152_s8 + $0x48] sm:$0xff]  ;;  %v640_v55 = vld [vmem:[%s1152_s8 + $0x40] sm:$0xff] }
  0x25   :  { %232 = vmatpush.msra.mxu1 %v131_v7  ;;  %625 = vmatmul.msk.f32.vlgmr.msra.gmra.mxu3 %vm140_vm0, %v122_v38  ;;  %v632_v56 = vld [vmem:[%s1152_s8 + $0x38] sm:$0xff]  ;;  %v631_v57 = vld [vmem:[%s1152_s8 + $0x30] sm:$0xff]  ;;  %v630_v58 = vld [vmem:[%s1152_s8 + $0x28] sm:$0xff] }
  0x26   :  { %346 = vmatpush.msrb.mxu3 %v333_v39  ;;  %323 = vmatpush.msrb.mxu2 %v304_v50  ;;  %v629_v59 = vld [vmem:[%s1152_s8 + $0x20] sm:$0xff]  ;;  %v299_v62 = vld [vmem:[#allocation7] sm:$0x1] }
  0x27   :  { %611 = vmatpush.xpose.msk.msra.mxu0 %vm140_vm0, %v134_v4  ;;  %233 = vmatpush.msra.mxu1 %v130_v8  ;;  %v455_v2 = vld [vmem:[#allocation9 + $0x58] sm:$0xff]  ;;  %v454_v3 = vld [vmem:[#allocation9 + $0x50] sm:$0xff]  ;;  %v453_v4 = vld [vmem:[#allocation9 + $0x48] sm:$0xff] }
  0x28   :  { %347 = vmatpush.msrb.mxu3 %v332_v40  ;;  %324 = vmatpush.msrb.mxu2 %v303_v52  ;;  %v644_v42 = vld [vmem:[%s1153_s9 + $0x2] sm:$0x1] }
  0x29   :  { %234 = vmatpush.msra.mxu1 %v129_v9 }
  0x2a   :  { %348 = vmatpush.msrb.mxu3 %v331_v41  ;;  %325 = vmatpush.msrb.mxu2 %v302_v54 }
  0x2b   :  { %612 = vmatpush.xpose.msk.msra.mxu0 %vm140_vm0, %v133_v5  ;;  %235 = vmatpush.msra.mxu1 %v128_v10  ;;  %v452_v5 = vld [vmem:[#allocation9 + $0x40] sm:$0xff] }
  0x2c   :  { %349 = vmatpush.msrb.mxu3 %v330_v43 }
  0x2d   :  { %236 = vmatpush.msra.mxu1 %v127_v11  ;;  %627 = vmatmul.msk.f32.vlgmr.msrb.gmra.mxu3 %vm140_vm0, %v1026_v17 }
  0x2e   :  { %420 = vmatpush.msra.mxu3 %v407_v44 }
  0x2f   :  { %613 = vmatpush.xpose.msk.msra.mxu0 %vm140_vm0, %v132_v6  ;;  %237 = vmatpush.msra.mxu1 %v126_v13  ;;  %v306_v6 = vld [vmem:[%s1153_s9] sm:$0x1] }
  0x30   :  { %421 = vmatpush.msra.mxu3 %v406_v45 }
  0x31   :  { %238 = vmatpush.msra.mxu1 %v125_v14 }
  0x32   :  { %422 = vmatpush.msra.mxu3 %v405_v46 }
  0x33   :  { %614 = vmatpush.xpose.msk.msra.mxu0 %vm140_vm0, %v131_v7  ;;  %239 = vmatpush.msra.mxu1 %v124_v15 }
  0x34   :  { %423 = vmatpush.msra.mxu3 %v404_v47 }
  0x35   :  { %240 = vmatpush.msra.mxu1 %v123_v16  ;;  %635 = vmatmul.msk.f32.vlgmr.msra.gmra.mxu3 %vm140_vm0, %v1026_v17 }
  0x36   :  { %497 = vmatpush.msrb.mxu3 %v643_v49 }
  0x37   :  { %615 = vmatpush.xpose.msk.msra.mxu0 %vm140_vm0, %v130_v8 }
  0x38   :  { %498 = vmatpush.msrb.mxu3 %v642_v51 }
  0x3a   :  { %499 = vmatpush.msrb.mxu3 %v641_v53 }
  0x3b   :  { %616 = vmatpush.xpose.msk.msra.mxu0 %vm140_vm0, %v129_v9 }
  0x3c   :  { %500 = vmatpush.msrb.mxu3 %v640_v55 }
  0x3f   :  { %617 = vmatpush.xpose.msk.msra.mxu0 %vm140_vm0, %v128_v10  ;;  %v355_v10 = vld [vmem:[%s1155_s11] sm:$0x1] }
  0x43   :  { %618 = vmatpush.xpose.msk.msra.mxu0 %vm140_vm0, %v127_v11 }
  0x47   :  { %619 = vmatpush.xpose.msk.msra.mxu0 %vm140_vm0, %v126_v13  ;;  %v633_v13 = vld [vmem:[%s1153_s9 + $0x1] sm:$0x1] }
  0x4b   :  { %620 = vmatpush.xpose.msk.msra.mxu0 %vm140_vm0, %v125_v14 }
  0x4f   :  { %621 = vmatpush.xpose.msk.msra.mxu0 %vm140_vm0, %v124_v15  ;;  %v517_v15 = vld [vmem:[#allocation10 + $0x18] sm:$0xff] }
  0x50   :  { %534 = vmatpush.msrb.mxu1 %v517_v15 }
  0x53   :  { %622 = vmatpush.xpose.msk.msra.mxu0 %vm140_vm0, %v123_v16  ;;  %v516_v16 = vld [vmem:[#allocation10 + $0x10] sm:$0xff] }
  0x54   :  { %535 = vmatpush.msrb.mxu1 %v516_v16 }
  0x56   :  { %623 = vmatmul.msk.f32.vlgmr.msra.gmra.mxu0 %vm140_vm0, %v1026_v17 }
  0xa8   :  { %v296_v60 = vpop.f32.mrf.mxu3 }
  0xb0   :  { %v351_v7 = vpop.f32.mrf.mxu3 }
  0xd3   :  { %v209_v19 = vpop.f32.mrf.mxu0 }
  0xd4   :  { %v210_v20 = vadd.f32 %v209_v19, %v139_v18 }
  0xd6   :  { %v213_v21 = vsel %vm212_vm2, %v210_v20, -inf }
  0xd7   :  { %214 = vmax.xlane.f32.xlu0 %v213_v21  ;;  %v425_v21 = vpop.f32.mrf.mxu3 }
 0x14a   :  { %v215_v22 = vpop.xlane.xlu0 %214 }
 0x14b   :  { %v216_v23 = vsub.f32 %v210_v20, %v215_v22  ;;  %v515_v20 = vld [vmem:[#allocation10 + $0x8] sm:$0xff] }
 0x14c   :  { %v636_v22 = vld [vmem:[%s1155_s11 + $0x1] sm:$0x1]  ;;  %536 = vmatpush.msrb.mxu1 %v515_v20 }
 0x14d   :  { %v217_v24 = vmul.f32 1.442695, %v216_v23 }
 0x14f   :  { %656 = vpow2.f32 %v217_v24  ;;  %v514_v24 = vld [vmem:[#allocation10] sm:$0xff] }
 0x150   :  { %537 = vmatpush.msrb.mxu1 %v514_v24 }
 0x155   :  { %v657_v25 = vpop.eup %656 }
 0x156   :  { %v219_v26 = vsel %vm212_vm2, %v657_v25, 0.0 }
 0x157   :  { %220 = vadd.xlane.f32.xlu0 %v219_v26 }
 0x1ca   :  { %v221_v33 = vpop.xlane.xlu0 %220 }
 0x1cb   :  { %658 = vrcp.f32 %v221_v33 }
 0x1d1   :  { %v659_v34 = vpop.eup %658 }
 0x1d2   :  { %v223_v35 = vmul.f32 %v659_v34, %v657_v25 }
 0x1d4   :  { %241 = vmatmul.f32.vlgmr.msra.gmra.mxu1 %v223_v35  ;;  %224 = vst [vmem:[#allocation13] sm:$0x1] %v223_v35  ;;  %v638_v35 = vld [vmem:[%s1155_s11 + $0x2] sm:$0x1] }
 0x1d5   :  { %577 = dma.vmem_to_hbm [thread:$0]  %s573_s30, 16, %s575_s28, [#allocation14]  }
 0x251   :  { %v242_v48 = vpop.f32.mrf.mxu1 }
 0x252   :  { %624 = vmatmul.msk.f32.vlgmr.msra.gmra.mxu2 %vm140_vm0, %v242_v48 }
 0x253   :  { %395 = vmatpush.msra.mxu2 %v632_v56 }
 0x255   :  { %396 = vmatpush.msra.mxu2 %v631_v57 }
 0x257   :  { %397 = vmatpush.msra.mxu2 %v630_v58 }
 0x259   :  { %398 = vmatpush.msra.mxu2 %v629_v59 }
 0x2d5   :  { %v273_v61 = vpop.f32.mrf.mxu2 }
 0x2d6   :  { %v297_v63 = vadd.f32 %v296_v60, %v273_v61 }
 0x2d8   :  { %v300_v0 = vadd.f32 %v299_v62, %v297_v63 }
 0x2da   :  { %v301_v1 = vmax.f32 %v300_v0, 0.0  ;;  %v518_v0 = vld [vmem:[%s1157_s13] sm:$0x1] }
 0x2dc   :  { %626 = vmatmul.msk.f32.vlgmr.msrb.gmra.mxu2 %vm140_vm0, %v301_v1  ;;  %645 = vmatmul.msk.f32.vlgmr.msrb.gmra.mxu3 %vm140_vm0, %v301_v1 }
 0x2dd   :  { %470 = vmatpush.msrb.mxu2 %v455_v2 }
 0x2df   :  { %471 = vmatpush.msrb.mxu2 %v454_v3 }
 0x2e1   :  { %472 = vmatpush.msrb.mxu2 %v453_v4 }
 0x2e3   :  { %473 = vmatpush.msrb.mxu2 %v452_v5 }
 0x2e4   :  { %634 = vmatmul.msk.f32.vlgmr.msra.gmra.mxu2 %vm140_vm0, %v301_v1 }
 0x2ec   :  { %639 = vmatmul.msk.f32.vlgmr.msrb.gmra.mxu2 %vm140_vm0, %v1026_v17 }
 0x35f   :  { %v327_v8 = vpop.f32.mrf.mxu2  ;;  %v502_v43 = vpop.f32.mrf.mxu3 }
 0x360   :  { %v328_v9 = vadd.f32 %v327_v8, %v306_v6  ;;  %v503_v48 = vadd.f32 %v644_v42, %v502_v43 }
 0x362   :  { %v354_v11 = vadd.f32 %v351_v7, %v328_v9 }
 0x364   :  { %v356_v12 = vadd.f32 %v355_v10, %v354_v11 }
 0x366   :  { %v628_v14 = vmul.f32 -1.442695, %v356_v12 }
 0x367   :  { %v400_v18 = vpop.f32.mrf.mxu2 }
 0x368   :  { %660 = vpow2.f32 %v628_v14  ;;  %v401_v19 = vadd.f32 %v633_v13, %v400_v18 }
 0x36a   :  { %v428_v23 = vadd.f32 %v425_v21, %v401_v19 }
 0x36c   :  { %v431_v25 = vadd.f32 %v636_v22, %v428_v23 }
 0x36e   :  { %v661_v26 = vpop.eup %660  ;;  %v637_v27 = vmul.f32 -1.442695, %v431_v25 }
 0x36f   :  { %v360_v28 = vadd.f32 1.0, %v661_v26  ;;  %v475_v36 = vpop.f32.mrf.mxu2 }
 0x370   :  { %662 = vpow2.f32 %v637_v27  ;;  %v476_v40 = vadd.f32 %v638_v35, %v475_v36 }
 0x371   :  { %664 = vrcp.f32 %v360_v28  ;;  %v372_v34 = vand.u32 2147483648, %v360_v28  ;;  %v370_v38 = vand.u32 2147483647, %v360_v28  ;;  %vm366_vm4 = vweird.f32 %v360_v28 }
 0x373   :  { %v373_v44 = vor.u32 1.1754944e-38, %v372_v34  ;;  %vm371_vm6 = vcmp.eq.f32.partialorder %v370_v38, 8.507059e+37 }
 0x376   :  { %v663_v29 = vpop.eup %662 }
 0x377   :  { %v665_v30 = vpop.eup %664  ;;  %v435_v31 = vadd.f32 1.0, %v663_v29 }
 0x378   :  { %v362_v32 = vmul.f32 %v665_v30, %v360_v28  ;;  %vm367_vm3 = vweird.f32 %v665_v30 }
 0x379   :  { %666 = vrcp.f32 %v435_v31  ;;  %vm368_vm5 = vmor %vm366_vm4, %vm367_vm3  ;;  %v447_v51 = vand.u32 2147483648, %v435_v31  ;;  %v445_v54 = vand.u32 2147483647, %v435_v31  ;;  %vm441_vm8 = vweird.f32 %v435_v31 }
 0x37a   :  { %v363_v33 = vsub.f32 1.0, %v362_v32 }
 0x37b   :  { %v448_v56 = vor.u32 1.1754944e-38, %v447_v51  ;;  %vm446_vm10 = vcmp.eq.f32.partialorder %v445_v54, 8.507059e+37 }
 0x37c   :  { %v364_v37 = vmul.f32 %v665_v30, %v363_v33 }
 0x37e   :  { %v365_v39 = vadd.f32 %v665_v30, %v364_v37 }
 0x37f   :  { %v667_v41 = vpop.eup %666 }
 0x380   :  { %v437_v45 = vmul.f32 %v667_v41, %v435_v31  ;;  %v369_v46 = vsel %vm368_vm5, %v665_v30, %v365_v39  ;;  %vm442_vm7 = vweird.f32 %v667_v41 }
 0x381   :  { %v374_v47 = vsel %vm371_vm6, %v373_v44, %v369_v46  ;;  %vm443_vm9 = vmor %vm441_vm8, %vm442_vm7 }
 0x382   :  { %v438_v49 = vsub.f32 1.0, %v437_v45  ;;  %v505_v50 = vmul.f32 %v476_v40, %v374_v47 }
 0x384   :  { %v506_v52 = vadd.f32 %v505_v50, %v503_v48  ;;  %v439_v53 = vmul.f32 %v667_v41, %v438_v49 }
 0x386   :  { %668 = vtanh.f32 %v506_v52  ;;  %v440_v55 = vadd.f32 %v667_v41, %v439_v53 }
 0x388   :  { %v444_v57 = vsel %vm443_vm9, %v667_v41, %v440_v55 }
 0x389   :  { %v449_v58 = vsel %vm446_vm10, %v448_v56, %v444_v57 }
 0x38a   :  { %v508_v59 = vsub.f32 1.0, %v449_v58  ;;  %v510_v62 = vmul.f32 %v449_v58, %v1026_v17 }
 0x38c   :  { %v669_v60 = vpop.eup %668 }
 0x38d   :  { %v509_v61 = vmul.f32 %v669_v60, %v508_v59 }
 0x38f   :  { %v511_v63 = vadd.f32 %v510_v62, %v509_v61 }
 0x391   :  { %646 = vmatmul.msk.f32.vlgmr.msrb.gmra.mxu1 %vm140_vm0, %v511_v63  ;;  %513 = vst.msk [vmem:[#allocation15] sm:$0x1] %vm117_vm1, %v511_v63 }
 0x392   :  { %588 = dma.vmem_to_hbm [thread:$0]  %s584_s19, 16, %s586_s17, [#allocation14]  }
 0x40e   :  { %v539_v1 = vpop.f32.mrf.mxu1 }
 0x40f   :  { %v540_v2 = vadd.f32 %v539_v1, %v518_v0 }
 0x411   :  { %v542_v3 = vsel %vm212_vm2, %v540_v2, -inf }
 0x412   :  { %543 = vmax.xlane.f32.xlu1 %v542_v3 }
 0x485   :  { %v544_v4 = vpop.xlane.xlu1 %543 }
 0x486   :  { %v545_v5 = vsub.f32 %v540_v2, %v544_v4 }
 0x488   :  { %v546_v6 = vmul.f32 1.442695, %v545_v5 }
 0x48a   :  { %670 = vpow2.f32 %v546_v6 }
 0x490   :  { %v671_v17 = vpop.eup %670 }
 0x491   :  { %v548_v7 = vsel %vm212_vm2, %v671_v17, 0.0 }
 0x492   :  { %549 = vadd.xlane.f32.xlu1 %v548_v7 }
 0x505   :  { %v550_v8 = vpop.xlane.xlu1 %549 }
 0x506   :  { %672 = vlog2.f32 %v550_v8 }
 0x50c   :  { %v673_v9 = vpop.eup %672 }
 0x50d   :  { %v552_v10 = vmul.f32 0.6931472, %v673_v9 }
 0x50f   :  { %v553_v11 = vadd.f32 %v552_v10, %v544_v4 }
 0x511   :  { %v554_v12 = vsub.f32 %v540_v2, %v553_v11 }
 0x513   :  { %555 = vst [vmem:[#allocation12] sm:$0x1] %v554_v12 }
 0x514   :  { %566 = dma.vmem_to_hbm [thread:$0]  %s562_s7, 16, %s564_s21, [#allocation6]  }
 0x515   :  { %848 = dma.done.wait [#allocation6], 16  }
 0x516   :  { %849 = vsyncadd [#allocation6], 4294967280 }
 0x517   :  { %850 = dma.done.wait [#allocation14], 32  }
 0x518   :  { %851 = vsyncadd [#allocation14], 4294967264 }
 0x519   :  { %601 = vsyncpa [#allocation5], 1 }
 0x51a   :  { %602 = vsyncpa [#allocation8], 1 }
 0x51b   :  { %603 = vsyncpa [#allocation11], 1 }
 0x51c   :  { %604 = vsyncpa [#allocation6], 1 }
 0x51d   :  { %605 = vsyncpa [#allocation14], 1 }

</bundles_post_ra>
